<compile_context>
chip_gen: v5e
topology: v5e:2x2
jax: 0.10.0
libtpu: 0.0.40
codegen_flags: <defaults>
</compile_context>

<pallas_src>
import functools

import numpy as np
import jax
import jax.numpy as jnp
from jax.experimental import pallas as pl
from jax.experimental.pallas import tpu as pltpu

BN_EPS = 1e-5
LANE = 128


def _round_up(x, m):
    return (x + m - 1) // m * m


# ---------------------------------------------------------------------------
# Pallas kernel: fused (patches @ W) + shift + activation
# ---------------------------------------------------------------------------
def _fused_conv_mm_kernel(slope, apply_act, p_ref, w_ref, shift_ref, o_ref):
    acc = jnp.dot(p_ref[...], w_ref[...], preferred_element_type=jnp.float32)
    acc = acc + shift_ref[...]
    if apply_act:
        if slope == 0.0:
            acc = jnp.maximum(acc, 0.0)           # ReLU
        else:
            acc = jnp.where(acc >= 0, acc, slope * acc)  # LeakyReLU
    o_ref[...] = acc


def fused_conv_matmul(patches, w, shift, *, act=True, slope=0.0, tile_m=512):
    """out = act(patches @ w + shift).

    patches: (M, K) bf16, w: (K, Npad) bf16 (Npad multiple of 128, BN folded),
    shift:   (Npad,) f32 (bias*scale + shift, zero in padded lanes).
    Returns (M, Npad) f32.
    """
    M, K = patches.shape
    K2, n_pad = w.shape
    assert K == K2 and n_pad % LANE == 0

    tile_m = _round_up(min(tile_m, _round_up(M, 8)), 8)
    m_pad = _round_up(M, tile_m)
    if m_pad != M:
        patches = jnp.pad(patches, ((0, m_pad - M), (0, 0)))
    grid = (m_pad // tile_m,)

    shift2 = shift.reshape(1, n_pad).astype(jnp.float32)
    kernel = functools.partial(_fused_conv_mm_kernel, float(slope), act)

    # VMEM: double-buffered patch + output tiles, weight + shift (conservative 2x).
    vmem_bytes = (2 * (tile_m * K * 2 + tile_m * n_pad * 4)
                  + 2 * (K * n_pad * 2) + 2 * n_pad * 4)
    vmem_limit = int(min(max(2 * vmem_bytes, 4 << 20), 48 << 20))

    cost = pl.CostEstimate(
        flops=2 * m_pad * K * n_pad,
        transcendentals=0,
        bytes_accessed=m_pad * K * 2 + K * n_pad * 2 + m_pad * n_pad * 4,
    )

    out = pl.pallas_call(
        kernel,
        out_shape=jax.ShapeDtypeStruct((m_pad, n_pad), jnp.float32),
        grid=grid,
        in_specs=[
            pl.BlockSpec((tile_m, K), lambda i: (i, 0)),   # patch rows: tiled
            pl.BlockSpec((K, n_pad), lambda i: (0, 0)),    # weight: resident
            pl.BlockSpec((1, n_pad), lambda i: (0, 0)),    # shift: resident
        ],
        out_specs=pl.BlockSpec((tile_m, n_pad), lambda i: (i, 0)),
        compiler_params=pltpu.CompilerParams(
            dimension_semantics=("parallel",),
            vmem_limit_bytes=vmem_limit,
        ),
        cost_estimate=cost,
    )(patches, w, shift2)
    return out[:M]


# ---------------------------------------------------------------------------
# Glue: im2col for 3D conv (pure strided slices; done in bf16)
# ---------------------------------------------------------------------------
def im2col_3d(x, ksize, stride, pad):
    # x: (B, D, H, W, C) channels-last
    B, D, H, W, C = x.shape
    if pad > 0:
        x = jnp.pad(x, ((0, 0), (pad, pad), (pad, pad), (pad, pad), (0, 0)))
    Do = (D + 2 * pad - ksize) // stride + 1
    Ho = (H + 2 * pad - ksize) // stride + 1
    Wo = (W + 2 * pad - ksize) // stride + 1
    cols = []
    for kd in range(ksize):
        for kh in range(ksize):
            for kw in range(ksize):
                sl = x[:,
                       kd:kd + (Do - 1) * stride + 1:stride,
                       kh:kh + (Ho - 1) * stride + 1:stride,
                       kw:kw + (Wo - 1) * stride + 1:stride,
                       :]
                cols.append(sl)
    patches = jnp.stack(cols, axis=4)  # (B, Do, Ho, Wo, k^3, C) tap-major, C inner
    return patches.reshape(B * Do * Ho * Wo, ksize ** 3 * C), (B, Do, Ho, Wo)


# ---------------------------------------------------------------------------
# Parameter construction (deterministic, synthetic)
# ---------------------------------------------------------------------------
def spectral_normalize(w, key, n_iter=5):
    out_dim = w.shape[0]
    wm = w.reshape(out_dim, -1)
    u = jax.random.normal(key, (out_dim,), jnp.float32)
    u = u / (jnp.linalg.norm(u) + 1e-12)
    v = wm.T @ u
    v = v / (jnp.linalg.norm(v) + 1e-12)
    for _ in range(n_iter):
        u = wm @ v
        u = u / (jnp.linalg.norm(u) + 1e-12)
        v = wm.T @ u
        v = v / (jnp.linalg.norm(v) + 1e-12)
    sigma = u @ (wm @ v)
    return w / sigma


def flatten_conv_weight(w):
    # (Cout, Cin, kd, kh, kw) -> (kd*kh*kw*Cin, Cout), tap-major with Cin inner
    cout, cin, kd, kh, kw = w.shape
    return jnp.transpose(w, (2, 3, 4, 1, 0)).reshape(kd * kh * kw * cin, cout)


def bn_fold(gamma, beta, mean, var, eps=BN_EPS):
    scale = gamma / jnp.sqrt(var + eps)
    shift = beta - mean * scale
    return scale, shift


def init_basic_layer(key, ch_in, ch_out, ksize=4, dstep=2, padding=1, bn=True):
    ks = jax.random.split(key, 7)
    w = spectral_normalize(
        0.1 * jax.random.normal(ks[0], (ch_out, ch_in, ksize, ksize, ksize),
                                jnp.float32), ks[1])
    b = 0.05 * jax.random.normal(ks[2], (ch_out,), jnp.float32)
    if bn:
        gamma = 1.0 + 0.1 * jax.random.normal(ks[3], (ch_out,), jnp.float32)
        beta = 0.1 * jax.random.normal(ks[4], (ch_out,), jnp.float32)
        mean = 0.1 * jax.random.normal(ks[5], (ch_out,), jnp.float32)
        var = 0.5 + jax.random.uniform(ks[6], (ch_out,), jnp.float32)
        scale, shift = bn_fold(gamma, beta, mean, var)
    else:
        scale = jnp.ones((ch_out,), jnp.float32)
        shift = jnp.zeros((ch_out,), jnp.float32)

    w_flat = flatten_conv_weight(w)                   # (k^3*Cin, Cout) f32
    w_fold = w_flat * scale[None, :]                  # fold BN scale into W
    shift_fold = b * scale + shift                    # fold bias + BN shift

    n_pad = _round_up(ch_out, LANE)                   # lane-dense output
    w_pad = jnp.pad(w_fold, ((0, 0), (0, n_pad - ch_out)))
    shift_pad = jnp.pad(shift_fold, (0, n_pad - ch_out))

    return dict(
        w_bf16=w_pad.astype(jnp.bfloat16),
        shift=shift_pad.astype(jnp.float32),
        w_f32=w_fold, shift_f32=shift_fold,           # f32 copies for reference
        ch_out=ch_out, ksize=ksize, stride=dstep, pad=padding,
    )


# ---------------------------------------------------------------------------
# Forward pass
# ---------------------------------------------------------------------------
def basic_layer_forward(x_in, p, activation="relu"):
    # NCDHW -> NDHWC (channels on lanes), bf16 so im2col patches are bf16 in HBM
    x = jnp.transpose(x_in, (0, 2, 3, 4, 1)).astype(jnp.bfloat16)
    patches, (B, Do, Ho, Wo) = im2col_3d(x, p["ksize"], p["stride"], p["pad"])
    slope = 0.0 if activation == "relu" else 0.2
    out = fused_conv_matmul(patches, p["w_bf16"], p["shift"], act=True, slope=slope)
    out = out[:, :p["ch_out"]].reshape(B, Do, Ho, Wo, p["ch_out"])
    return jnp.transpose(out, (0, 4, 1, 2, 3))        # back to NCDHW


def basic_layer_reference(x_in, p):
    # Pure-JAX f32 reference of the same eval-mode math (for correctness check)
    x = jnp.transpose(x_in, (0, 2, 3, 4, 1)).astype(jnp.float32)
    patches, (B, Do, Ho, Wo) = im2col_3d(x, p["ksize"], p["stride"], p["pad"])
    out = jnp.maximum(patches @ p["w_f32"] + p["shift_f32"][None, :], 0.0)
    out = out.reshape(B, Do, Ho, Wo, p["ch_out"])
    return jnp.transpose(out, (0, 4, 1, 2, 3))


if __name__ == "__main__":
    key = jax.random.PRNGKey(0)
    k_x, k_p = jax.random.split(key)

    B, ch_in, ch_out = 2, 4, 16
    D = H = W = 16

    x_in = jax.random.normal(k_x, (B, ch_in, D, H, W), jnp.float32)
    params = init_basic_layer(k_p, ch_in, ch_out, ksize=4, dstep=2, padding=1, bn=True)

    out = jax.block_until_ready(basic_layer_forward(x_in, params))
    assert out.shape == (B, ch_out, D // 2, H // 2, W // 2), out.shape
    assert bool(jnp.all(jnp.isfinite(out)))
    assert bool(jnp.all(out >= 0.0))                  # ReLU

    ref = jax.block_until_ready(basic_layer_reference(x_in, params))
    assert bool(jnp.allclose(out, ref, rtol=5e-2, atol=1e-1)), (
        float(jnp.max(jnp.abs(out - ref))))

    print("KERNEL_OK")
</pallas_src>

<mosaic_0001>
module attributes {stable_mosaic.version = 11 : i64} {
  func.func @_fused_conv_mm_kernel(%arg0: i32, %arg1: memref<512x256xbf16, #tpu.memory_space<vmem>>, %arg2: memref<256x128xbf16, #tpu.memory_space<vmem>>, %arg3: memref<1x128xf32, #tpu.memory_space<vmem>>, %arg4: memref<512x128xf32, #tpu.memory_space<vmem>>) attributes {dimension_semantics = [#tpu.dimension_semantics<parallel>], iteration_bounds = array<i64: 2>, scalar_prefetch = 0 : i64, scratch_operands = 0 : i64, tpu.core_type = #tpu.core_type<tc>, window_params = [{transform_indices = @transform_0, window_bounds = array<i64: 512, 256>}, {pipeline_mode = #tpu.pipeline_mode<synchronous>, transform_indices = @transform_1, window_bounds = array<i64: 256, 128>}, {pipeline_mode = #tpu.pipeline_mode<synchronous>, transform_indices = @transform_2, window_bounds = array<i64: 1, 128>}, {transform_indices = @transform_3, window_bounds = array<i64: 512, 128>}]} {
    %c0 = arith.constant 0 : index
    %c0_0 = arith.constant 0 : index
    %0 = vector.load %arg1[%c0, %c0_0] : memref<512x256xbf16, #tpu.memory_space<vmem>>, vector<512x256xbf16>
    %c0_1 = arith.constant 0 : index
    %c0_2 = arith.constant 0 : index
    %1 = vector.load %arg2[%c0_1, %c0_2] : memref<256x128xbf16, #tpu.memory_space<vmem>>, vector<256x128xbf16>
    %cst = arith.constant dense<0.000000e+00> : vector<512x128xf32>
    %2 = tpu.matmul %0, %1, %cst {dimension_numbers = #tpu.dot_dimension_numbers<[1], [0], [0], [1], [0, 0, 1, 1], [], []>} : vector<512x256xbf16>, vector<256x128xbf16>, vector<512x128xf32> -> vector<512x128xf32>
    %c0_3 = arith.constant 0 : index
    %c0_4 = arith.constant 0 : index
    %3 = vector.load %arg3[%c0_3, %c0_4] : memref<1x128xf32, #tpu.memory_space<vmem>>, vector<1x128xf32>
    %4 = vector.broadcast %3 : vector<1x128xf32> to vector<512x128xf32>
    %5 = arith.addf %2, %4 : vector<512x128xf32>
    %cst_5 = arith.constant 0.000000e+00 : f32
    %6 = vector.broadcast %cst_5 : f32 to vector<512x128xf32>
    %7 = arith.maximumf %5, %6 : vector<512x128xf32>
    %c0_6 = arith.constant 0 : index
    %c0_7 = arith.constant 0 : index
    %8 = vector.load %arg4[%c0_6, %c0_7] : memref<512x128xf32, #tpu.memory_space<vmem>>, vector<512x128xf32>
    tpu.vector_store %arg4[%c0_6, %c0_7], %7 {strides = array<i32>} : memref<512x128xf32, #tpu.memory_space<vmem>>, vector<512x128xf32>,
    return
  }
  func.func @transform_0(%arg0: i32) -> (i32, i32) {
    %c0_i32 = arith.constant 0 : i32
    %c0_i32_0 = arith.constant 0 : i32
    return %arg0, %c0_i32 : i32, i32
  }
  func.func @transform_1(%arg0: i32) -> (i32, i32) {
    %c0_i32 = arith.constant 0 : i32
    %c0_i32_0 = arith.constant 0 : i32
    %c0_i32_1 = arith.constant 0 : i32
    return %c0_i32, %c0_i32_0 : i32, i32
  }
  func.func @transform_2(%arg0: i32) -> (i32, i32) {
    %c0_i32 = arith.constant 0 : i32
    %c0_i32_0 = arith.constant 0 : i32
    %c0_i32_1 = arith.constant 0 : i32
    return %c0_i32, %c0_i32_0 : i32, i32
  }
  func.func @transform_3(%arg0: i32) -> (i32, i32) {
    %c0_i32 = arith.constant 0 : i32
    %c0_i32_0 = arith.constant 0 : i32
    return %arg0, %c0_i32 : i32, i32
  }
}

</mosaic_0001>

<bundles_post_ra>
// kernel: tpu_custom_call.1
= control target key start
LH: loop header
LB: loop body
LE: loop exit
PB: predicated region body
PF: predicated region fallthrough
CT: control target
= control target key end

     0   :  { %8 = vsyncpa [#allocation3], 0  ;;  %s2361_s0 = inlined_call_operand.hbm [shape: bf16[1024,256], index: 0, kind: input, shape index: {}]   ;;  %s2362_s1 = inlined_call_operand.hbm [shape: bf16[256,128], index: 1, kind: input, shape index: {}]   ;;  %s2363_s2 = inlined_call_operand.vmem [shape: f32[1,128], index: 2, kind: input, shape index: {}]   ;;  %s2364_s3 = inlined_call_operand.hbm [shape: f32[1024,128], index: 3, kind: output, shape index: {}]  }
   0x1   :  { %10 = vsyncpa [#allocation3 + $0x1], 0 }
   0x2   :  { %11 = vsyncpa [#allocation6], 0 }
   0x3   :  { %12 = vsyncpa [#allocation4], 0 }
   0x4   :  { %14 = vsyncpa [#allocation4 + $0x1], 0  ;;  %s1951_s12 = smov 0   ;;  %s1953_s13 = smov 0  }
   0x5   :  { %s1955_s14 = smov 0   ;;  %s1957_s15 = smov 0  }
   0x6 LB: > { %s1972_s16 = sadd.s32 4294967295, %s1922_s15   ;;  %s1292_s17 = sadd.s32 4294967294, %s1922_s15   ;;  %s1922_s15 = sphi %s1957_s15, %s2374_s15   ;;  %s1918_s14 = sphi %s1955_s14, %s2373_s14   ;;  %s1914_s13 = sphi %s1953_s13, %s2372_s13   ;;  %s1910_s12 = sphi %s1951_s12, %s2371_s12  }
   0x7   : > { %p40_p0 = scmp.ne.s32.totalorder %s1914_s13, %s1910_s12  ;;  %p41_p1 = scmp.eq.s32.totalorder %s1972_s16, 0 }
   0x8   : > { %p106_p2 = scmp.eq.s32.totalorder %s1972_s16, 1  ;;  %p112_p3 = scmp.eq.s32.totalorder %s1292_s17, 1 }
   0x9   : > { %p1981_p4 = por %p41_p1, %p40_p0  ;;  %p1293_p5 = scmp.ge.s32.totalorder %s1922_s15, 1 }
   0xa   : > { %p1986_p6 = por %p112_p3, %p40_p0  ;;  %p119_p7 = scmp.lt.s32.totalorder %s1922_s15, 3 }
   0xb   : > { %s130_s22 = sshll.u32 %s2362_s1, 4  ;;  %s1924_s24 = smov [#allocation5]   ;;  %s131_s22 = int_to_ptr.hbm [resolvable:$true] %s130_s22 }
   0xc   : > { %p1994_p8 = pnand %p1293_p5, %p119_p7  ;;  %s132_s25 = sshll.u32 %s1924_s24, 4  ;;  %s133_s25 = int_to_ptr.vmem [resolvable:$true] %s132_s25 }
   0xd   : > { %s2004_s26 = sadd.s32 1, %s1922_s15   ;;  %s1925_s27 = smov 64  }
   0xe   : > { %p1736_p9 = pneg %p1994_p8  ;;  %s1926_s28 = smov 4  }
   0xf   : > { %s24_s29 = ssub.s32 %s1922_s15, %s2004_s26  ;;  %s27_s30 = sadd.s32 1, %s1918_s14 }
  0x10   : > { %p1737_p10 = pnand %p1736_p9, %p41_p1  ;;  %p25_p12 = scmp.eq.s32.totalorder %s24_s29, 0 }
  0x11   : > { %p34_p13 = scmp.ne.s32.totalorder %s1918_s14, %s1914_s13  ;;  %p35_p0 = scmp.eq.s32.totalorder %s1922_s15, 0 }
  0x12   : > { %1739 = dma.hbm_to_vmem [thread:$0]  (!%p1737_p10), %s131_s22, 2048, %s133_s25, [#allocation6], %s1925_s27, %s1925_s27, %s1926_s28  }
  0x13   : > { %p1749_p3 = scmp.lt.s32.totalorder %s1922_s15, 2  ;;  %p36_p5 = por %p35_p0, %p34_p13 }
  0x14   : > { %s2014_s4 = scalar_select %p25_p12, %s1918_s14, %s27_s30  }
  0x15   : > { %p2018_p7 = por %p106_p2, %p34_p13  ;;  %s149_s6 = sand.u32 1, %s1918_s14  }
  0x16   : > { %s1630_s7 = sshll.u32 %s1922_s15, 9  ;;  %s1296_s8 = sshll.u32 %s149_s6, 9 }
  0x17   : > { %s159_s11 = scalar_lea.hbm %s2361_s0, %s1630_s7  ;;  %s153_s20 = scalar_lea.vmem [#allocation2], %s1296_s8 }
  0x18   : > { %s160_s17 = sshll.u32 %s159_s11, 4  ;;  %s162_s21 = sshll.u32 %s153_s20, 4  ;;  %s161_s17 = int_to_ptr.hbm [resolvable:$true] %s160_s17  ;;  %s163_s21 = int_to_ptr.vmem [resolvable:$true] %s162_s21 }
  0x19   : > { %p2029_p9 = pnand %p1749_p3, %p36_p5  ;;  %s150_s24 = scalar_lea.sflag [#allocation3], %s149_s6 }
  0x1a   : > { %s1822_s25 = sshra.s32 %s161_s17, 4  ;;  %s1829_s30 = scalar_lea.hbm %s2361_s0, 1024  ;;  %s1823_s25 = int_to_ptr.hbm [resolvable:$true] %s1822_s25 }
  0x1b   : > { %s1824_s27 = scalar_lea.hbm %s1823_s25, 512  ;;  %p1826_p10 = pneg %p2029_p9 }
  0x1c   : > { %p1825_p2 = scmp.ne.s32.totalorder %s1823_s25, %s1824_s27  ;;  %p1830_p0 = scmp.lt.s32.totalorder %s1823_s25, %s2361_s0 }
  0x1d   : > { %p1831_p3 = scmp.lt.s32.totalorder %s1829_s30, %s1824_s27 }
  0x1e   : > { %p1827_p12 = pnand %p1826_p10, %p1825_p2 }
  0x1f   : > { %p1832_p5 = por %p1831_p3, %p1830_p0 }
  0x20   : > { %p1828_p13 = pneg %p1827_p12 }
  0x22   : > { %p1833_p11 = pnand %p1832_p5, %p1828_p13 }
  0x24   : > { %1836 = shalt.err (!%p1833_p11)
}
  0x25   : > { %s1927_s6 = smov 128   ;;  %s1928_s9 = smov 8  }
  0x26   : > { %1743 = dma.hbm_to_vmem [thread:$0]  (!%p2029_p9), %s161_s17, 8192, %s163_s21, %s150_s24, %s1927_s6, %s1927_s6, %s1928_s9  }
  0x27   : > { %174 = sbr.rel (%p1994_p8) target bundleno = 469 (0x1d5), region = 32  ;;  %s2046_s10 = sand.u32 (!%p1994_p8), 1, %s1914_s13  }
  0x28   : > { %s1301_s11 = sshll.u32 (!%p1994_p8), %s2046_s10, 9  ;;  %s177_s20 = scalar_lea.sflag (!%p1994_p8), [#allocation3], %s2046_s10 }
  0x29   : > { %s2052_s25 = scalar_lea.vmem (!%p1994_p8), [#allocation2], %s1301_s11 }
  0x2c   : > { %1897 = dma.done.wait (%p1981_p4), %s177_s20, 8192  }
  0x2d   : > { %1899 = vsyncadd (%p1981_p4), %s177_s20, 4294959104 }
  0x2e   : > { %1901 = dma.done.wait (%p41_p1), [#allocation6], 2048  }
  0x2f   : > { %1903 = vsyncadd (%p41_p1), [#allocation6], 4294965248  ;;  %v1702_v0 = vld [vmem:[#allocation5 + $0x38] sm:$0xff]  ;;  %v1701_v2 = vld [vmem:[#allocation5 + $0x30] sm:$0xff]  ;;  %s2142_s17 = scalar_lea.vmem [#allocation7], %s1301_s11  ;;  %s1711_s21 = sshll.u32 %s1972_s16, 9 }
  0x30   : > { %v1710_v1 = vld [vmem:[#allocation5 + $0x78] sm:$0xff]  ;;  %727 = vmatpush.bf16.msra.mxu0 %v1702_v0  ;;  %1712 = vmatpush.bf16.msra.mxu2 %v1702_v0  ;;  %v1709_v3 = vld [vmem:[#allocation5 + $0x70] sm:$0xff]  ;;  %v1700_v4 = vld [vmem:[#allocation5 + $0x28] sm:$0xff]  ;;  %s1205_s27 = scalar_lea.hbm %s2364_s3, %s1711_s21  ;;  %s1206_s28 = sshll.u32 %s2142_s17, 4  ;;  %s1207_s28 = int_to_ptr.vmem [resolvable:$true] %s1206_s28 }
  0x31   : > { %896 = vmatpush.bf16.msra.mxu1 %v1710_v1  ;;  %1720 = vmatpush.bf16.msra.mxu3 %v1710_v1  ;;  %v1708_v5 = vld [vmem:[#allocation5 + $0x68] sm:$0xff]  ;;  %v1699_v6 = vld [vmem:[#allocation5 + $0x20] sm:$0xff]  ;;  %v1698_v8 = vld [vmem:[#allocation5 + $0x18] sm:$0xff]  ;;  %s1208_s29 = sshll.u32 %s1205_s27, 4  ;;  %s1194_s16 = scalar_lea.sflag [#allocation4], %s2046_s10  ;;  %s1209_s29 = int_to_ptr.hbm [resolvable:$true] %s1208_s29 }
  0x32   : > { %v1707_v7 = vld [vmem:[#allocation5 + $0x60] sm:$0xff]  ;;  %v1706_v9 = vld [vmem:[#allocation5 + $0x58] sm:$0xff]  ;;  %v1697_v10 = vld [vmem:[#allocation5 + $0x10] sm:$0xff]  ;;  %s1866_s30 = sshra.s32 %s1209_s29, 4  ;;  %s1872_s9 = scalar_lea.hbm %s2364_s3, 1024  ;;  %s1867_s30 = int_to_ptr.hbm [resolvable:$true] %s1866_s30 }
  0x33   : > { %v1705_v11 = vld [vmem:[#allocation5 + $0x50] sm:$0xff]  ;;  %v1696_v12 = vld [vmem:[#allocation5 + $0x8] sm:$0xff]  ;;  %v1695_v14 = vld [vmem:[#allocation5] sm:$0xff]  ;;  %s1868_s7 = scalar_lea.hbm %s1867_s30, 512  ;;  %p1873_p11 = scmp.lt.s32.totalorder %s1867_s30, %s2364_s3 }
  0x34   : > { %728 = vmatpush.bf16.msra.mxu0 %v1701_v2  ;;  %1713 = vmatpush.bf16.msra.mxu2 %v1701_v2  ;;  %v1704_v13 = vld [vmem:[#allocation5 + $0x48] sm:$0xff]  ;;  %v1703_v15 = vld [vmem:[#allocation5 + $0x40] sm:$0xff]  ;;  %v1314_v28 = vld [vmem:[%s2052_s25 + $0x10] sm:$0xf]  ;;  %p1869_p1 = scmp.ne.s32.totalorder %s1867_s30, %s1868_s7  ;;  %p1874_p9 = scmp.lt.s32.totalorder %s1872_s9, %s1868_s7 }
  0x35   : > { %897 = vmatpush.bf16.msra.mxu1 %v1709_v3  ;;  %1721 = vmatpush.bf16.msra.mxu3 %v1709_v3  ;;  %v1306_v16 = vld [vmem:[%s2052_s25] sm:$0xf]  ;;  %v1632_v17 = vld [vmem:[%s2052_s25 + $0x4] sm:$0xf0]  ;;  %v1631_v20 = vld [vmem:[%s2052_s25 + $0x4] sm:$0xf] }
  0x36   : > { %v1434_v18 = vld [vmem:[%s2052_s25 + $0x100] sm:$0xf]  ;;  %v1664_v19 = vld [vmem:[%s2052_s25 + $0x104] sm:$0xf0]  ;;  %v1308_v21 = vld [vmem:[%s2052_s25 + $0x8] sm:$0xf0]  ;;  %v1307_v24 = vor.u32 %v1632_v17, %v1306_v16  ;;  %p1870_p4 = pnand %p1869_p1, %p2018_p7  ;;  %p1875_p2 = por %p1874_p9, %p1873_p11 }
  0x37   : > { %v1663_v22 = vld [vmem:[%s2052_s25 + $0x104] sm:$0xf]  ;;  %v1436_v23 = vld [vmem:[%s2052_s25 + $0x108] sm:$0xf0]  ;;  %v1435_v25 = vor.u32 %v1664_v19, %v1434_v18  ;;  %v1311_v26 = vor.u32 %v1631_v20, %v1308_v21  ;;  %v1634_v29 = vld [vmem:[%s2052_s25 + $0x14] sm:$0xf0] }
  0x38   : > { %729 = vmatpush.bf16.msra.mxu0 %v1700_v4  ;;  %1714 = vmatpush.bf16.msra.mxu2 %v1700_v4  ;;  %v1439_v27 = vor.u32 %v1663_v22, %v1436_v23  ;;  %v1442_v30 = vld [vmem:[%s2052_s25 + $0x110] sm:$0xf]  ;;  %v1666_v31 = vld [vmem:[%s2052_s25 + $0x114] sm:$0xf0]  ;;  %v1633_v32 = vld [vmem:[%s2052_s25 + $0x14] sm:$0xf]  ;;  %v1315_v36 = vor.u32 %v1634_v29, %v1314_v28  ;;  %p1871_p8 = pneg %p1870_p4 }
  0x39   : > { %898 = vmatpush.bf16.msra.mxu1 %v1708_v5  ;;  %1722 = vmatpush.bf16.msra.mxu3 %v1708_v5  ;;  %v1316_v33 = vld [vmem:[%s2052_s25 + $0x18] sm:$0xf0]  ;;  %v1665_v34 = vld [vmem:[%s2052_s25 + $0x114] sm:$0xf]  ;;  %v1443_v37 = vor.u32 %v1666_v31, %v1442_v30  ;;  %v1322_v40 = vld [vmem:[%s2052_s25 + $0x20] sm:$0xf] }
  0x3a   : > { %v1444_v35 = vld [vmem:[%s2052_s25 + $0x118] sm:$0xf0]  ;;  %v1319_v38 = vor.u32 %v1633_v32, %v1316_v33  ;;  %v1636_v41 = vld [vmem:[%s2052_s25 + $0x24] sm:$0xf0]  ;;  %v1450_v42 = vld [vmem:[%s2052_s25 + $0x120] sm:$0xf]  ;;  %p1876_p10 = pnand %p1875_p2, %p1871_p8 }
  0x3b   : > { %v1447_v39 = vor.u32 %v1665_v34, %v1444_v35  ;;  %v1668_v43 = vld [vmem:[%s2052_s25 + $0x124] sm:$0xf0]  ;;  %v1635_v44 = vld [vmem:[%s2052_s25 + $0x24] sm:$0xf]  ;;  %v1324_v45 = vld [vmem:[%s2052_s25 + $0x28] sm:$0xf0]  ;;  %v1323_v48 = vor.u32 %v1636_v41, %v1322_v40 }
  0x3c   : > { %730 = vmatpush.bf16.msra.mxu0 %v1699_v6  ;;  %1715 = vmatpush.bf16.msra.mxu2 %v1699_v6  ;;  %v1667_v46 = vld [vmem:[%s2052_s25 + $0x124] sm:$0xf]  ;;  %v1452_v47 = vld [vmem:[%s2052_s25 + $0x128] sm:$0xf0]  ;;  %v1451_v49 = vor.u32 %v1668_v43, %v1450_v42  ;;  %v1327_v50 = vor.u32 %v1635_v44, %v1324_v45  ;;  %v1330_v52 = vld [vmem:[%s2052_s25 + $0x30] sm:$0xf] }
  0x3d   : > { %899 = vmatpush.bf16.msra.mxu1 %v1707_v7  ;;  %1723 = vmatpush.bf16.msra.mxu3 %v1707_v7  ;;  %v1455_v51 = vor.u32 %v1667_v46, %v1452_v47  ;;  %v1638_v53 = vld [vmem:[%s2052_s25 + $0x34] sm:$0xf0]  ;;  %v1458_v54 = vld [vmem:[%s2052_s25 + $0x130] sm:$0xf]  ;;  %v1637_v56 = vld [vmem:[%s2052_s25 + $0x34] sm:$0xf] }
  0x3e   : > { %v1670_v55 = vld [vmem:[%s2052_s25 + $0x134] sm:$0xf0]  ;;  %v1332_v57 = vld [vmem:[%s2052_s25 + $0x38] sm:$0xf0]  ;;  %v1669_v58 = vld [vmem:[%s2052_s25 + $0x134] sm:$0xf]  ;;  %v1331_v60 = vor.u32 %v1638_v53, %v1330_v52 }
  0x3f   : > { %v1460_v59 = vld [vmem:[%s2052_s25 + $0x138] sm:$0xf0]  ;;  %v1459_v61 = vor.u32 %v1670_v55, %v1458_v54  ;;  %v1335_v62 = vor.u32 %v1637_v56, %v1332_v57  ;;  %v1338_v0 = vld [vmem:[%s2052_s25 + $0x40] sm:$0xf]  ;;  %v1640_v1 = vld [vmem:[%s2052_s25 + $0x44] sm:$0xf0] }
  0x40   : > { %731 = vmatpush.bf16.msra.mxu0 %v1698_v8  ;;  %1716 = vmatpush.bf16.msra.mxu2 %v1698_v8  ;;  %v1463_v63 = vor.u32 %v1669_v58, %v1460_v59  ;;  %v1466_v2 = vld [vmem:[%s2052_s25 + $0x140] sm:$0xf]  ;;  %v1672_v3 = vld [vmem:[%s2052_s25 + $0x144] sm:$0xf0]  ;;  %v1639_v4 = vld [vmem:[%s2052_s25 + $0x44] sm:$0xf]  ;;  %v1339_v8 = vor.u32 %v1640_v1, %v1338_v0 }
  0x41   : > { %900 = vmatpush.bf16.msra.mxu1 %v1706_v9  ;;  %1724 = vmatpush.bf16.msra.mxu3 %v1706_v9  ;;  %v1340_v5 = vld [vmem:[%s2052_s25 + $0x48] sm:$0xf0]  ;;  %v1671_v6 = vld [vmem:[%s2052_s25 + $0x144] sm:$0xf]  ;;  %v1467_v9 = vor.u32 %v1672_v3, %v1466_v2  ;;  %v1641_v16 = vld [vmem:[%s2052_s25 + $0x54] sm:$0xf] }
  0x42   : > { %v1468_v7 = vld [vmem:[%s2052_s25 + $0x148] sm:$0xf0]  ;;  %v1348_v17 = vld [vmem:[%s2052_s25 + $0x58] sm:$0xf0]  ;;  %v1673_v18 = vld [vmem:[%s2052_s25 + $0x154] sm:$0xf] }
  0x43   : > { %v1476_v19 = vld [vmem:[%s2052_s25 + $0x158] sm:$0xf0]  ;;  %v1351_v22 = vor.u32 %v1641_v16, %v1348_v17  ;;  %v1643_v28 = vld [vmem:[%s2052_s25 + $0x64] sm:$0xf]  ;;  %v1356_v29 = vld [vmem:[%s2052_s25 + $0x68] sm:$0xf0] }
  0x44   : > { %732 = vmatpush.bf16.msra.mxu0 %v1697_v10  ;;  %1717 = vmatpush.bf16.msra.mxu2 %v1697_v10  ;;  %v1343_v10 = vor.u32 %v1639_v4, %v1340_v5  ;;  %v1479_v23 = vor.u32 %v1673_v18, %v1476_v19  ;;  %v1675_v30 = vld [vmem:[%s2052_s25 + $0x164] sm:$0xf]  ;;  %v1484_v31 = vld [vmem:[%s2052_s25 + $0x168] sm:$0xf0]  ;;  %v1359_v34 = vor.u32 %v1643_v28, %v1356_v29  ;;  %v1645_v40 = vld [vmem:[%s2052_s25 + $0x74] sm:$0xf] }
  0x45   : > { %901 = vmatpush.bf16.msra.mxu1 %v1705_v11  ;;  %1725 = vmatpush.bf16.msra.mxu3 %v1705_v11  ;;  %v1471_v11 = vor.u32 %v1671_v6, %v1468_v7  ;;  %v1487_v35 = vor.u32 %v1675_v30, %v1484_v31  ;;  %v1364_v41 = vld [vmem:[%s2052_s25 + $0x78] sm:$0xf0]  ;;  %v1677_v42 = vld [vmem:[%s2052_s25 + $0x174] sm:$0xf]  ;;  %v1680_v52 = vld [vmem:[%s2052_s25 + $0x184] sm:$0xf0] }
  0x46   : > { %v1492_v43 = vld [vmem:[%s2052_s25 + $0x178] sm:$0xf0]  ;;  %v1367_v46 = vor.u32 %v1645_v40, %v1364_v41  ;;  %v1647_v53 = vld [vmem:[%s2052_s25 + $0x84] sm:$0xf]  ;;  %v1372_v54 = vld [vmem:[%s2052_s25 + $0x88] sm:$0xf0] }
  0x47   : > { %v1495_v47 = vor.u32 %v1677_v42, %v1492_v43  ;;  %v1679_v55 = vld [vmem:[%s2052_s25 + $0x184] sm:$0xf]  ;;  %v1500_v56 = vld [vmem:[%s2052_s25 + $0x188] sm:$0xf0]  ;;  %v1380_v16 = vld [vmem:[%s2052_s25 + $0x98] sm:$0xf0] }
  0x48   : > { %733 = vmatpush.bf16.msra.mxu0 %v1696_v12  ;;  %1718 = vmatpush.bf16.msra.mxu2 %v1696_v12  ;;  %v1346_v12 = vld [vmem:[%s2052_s25 + $0x50] sm:$0xf]  ;;  %v1681_v18 = vld [vmem:[%s2052_s25 + $0x194] sm:$0xf]  ;;  %v1508_v19 = vld [vmem:[%s2052_s25 + $0x198] sm:$0xf0] }
  0x49   : > { %902 = vmatpush.bf16.msra.mxu1 %v1704_v13  ;;  %1726 = vmatpush.bf16.msra.mxu3 %v1704_v13  ;;  %v1642_v13 = vld [vmem:[%s2052_s25 + $0x54] sm:$0xf0]  ;;  %v1386_v41 = vld [vmem:[%s2052_s25 + $0xa0] sm:$0xf] }
  0x4a   : > { %v1347_v20 = vor.u32 %v1642_v13, %v1346_v12  ;;  %v1650_v12 = vld [vmem:[%s2052_s25 + $0x94] sm:$0xf0]  ;;  %v1506_v13 = vld [vmem:[%s2052_s25 + $0x190] sm:$0xf] }
  0x4c   : > { %734 = vmatpush.bf16.msra.mxu0 %v1695_v14  ;;  %1719 = vmatpush.bf16.msra.mxu2 %v1695_v14  ;;  %v1474_v14 = vld [vmem:[%s2052_s25 + $0x150] sm:$0xf] }
  0x4d   : > { %903 = vmatpush.bf16.msra.mxu1 %v1703_v15  ;;  %1727 = vmatpush.bf16.msra.mxu3 %v1703_v15  ;;  %v1674_v15 = vld [vmem:[%s2052_s25 + $0x154] sm:$0xf0] }
  0x4e   : > { %v1475_v21 = vor.u32 %v1674_v15, %v1474_v14  ;;  %v1682_v14 = vld [vmem:[%s2052_s25 + $0x194] sm:$0xf0]  ;;  %v1649_v15 = vld [vmem:[%s2052_s25 + $0x94] sm:$0xf] }
  0x4f   : > { %735 = vmatmul.bf16.vlgmr.msra.gmra.mxu0 %v1307_v24  ;;  %815 = vmatmul.bf16.vlgmr.msra.gmra.mxu2 %v1435_v25  ;;  %v1354_v24 = vld [vmem:[%s2052_s25 + $0x60] sm:$0xf]  ;;  %v1644_v25 = vld [vmem:[%s2052_s25 + $0x64] sm:$0xf0] }
  0x50   : > { %904 = vmatmul.bf16.vlgmr.msra.gmra.mxu1 %v1311_v26  ;;  %984 = vmatmul.bf16.vlgmr.msra.gmra.mxu3 %v1439_v27  ;;  %v1482_v26 = vld [vmem:[%s2052_s25 + $0x160] sm:$0xf]  ;;  %v1676_v27 = vld [vmem:[%s2052_s25 + $0x164] sm:$0xf0]  ;;  %v1355_v32 = vor.u32 %v1644_v25, %v1354_v24  ;;  %v1507_v24 = vor.u32 %v1682_v14, %v1506_v13  ;;  %v1654_v13 = vld [vmem:[%s2052_s25 + $0xb4] sm:$0xf0] }
  0x51   : > { %v1483_v33 = vor.u32 %v1676_v27, %v1482_v26  ;;  %v1383_v26 = vor.u32 %v1649_v15, %v1380_v16  ;;  %v1511_v27 = vor.u32 %v1681_v18, %v1508_v19  ;;  %v1522_v14 = vld [vmem:[%s2052_s25 + $0x1b0] sm:$0xf]  ;;  %v1686_v15 = vld [vmem:[%s2052_s25 + $0x1b4] sm:$0xf0]  ;;  %v1653_v16 = vld [vmem:[%s2052_s25 + $0xb4] sm:$0xf] }
  0x52   : > { %v1685_v19 = vld [vmem:[%s2052_s25 + $0x1b4] sm:$0xf] }
  0x5f   : > { %740 = vmatmul.bf16.gmra.mxu0 %v1315_v36  ;;  %820 = vmatmul.bf16.gmra.mxu2 %v1443_v37  ;;  %v1362_v36 = vld [vmem:[%s2052_s25 + $0x70] sm:$0xf]  ;;  %v1646_v37 = vld [vmem:[%s2052_s25 + $0x74] sm:$0xf0] }
  0x60   : > { %909 = vmatmul.bf16.gmra.mxu1 %v1319_v38  ;;  %989 = vmatmul.bf16.gmra.mxu3 %v1447_v39  ;;  %v1490_v38 = vld [vmem:[%s2052_s25 + $0x170] sm:$0xf]  ;;  %v1678_v39 = vld [vmem:[%s2052_s25 + $0x174] sm:$0xf0]  ;;  %v1363_v44 = vor.u32 %v1646_v37, %v1362_v36 }
  0x61   : > { %v1491_v45 = vor.u32 %v1678_v39, %v1490_v38 }
  0x6f   : > { %745 = vmatmul.bf16.gmra.mxu0 %v1323_v48  ;;  %825 = vmatmul.bf16.gmra.mxu2 %v1451_v49  ;;  %v2129_v48 = vld [vmem:[%s2363_s2] ss:$0 sm:$0xff] }
  0x70   : > { %914 = vmatmul.bf16.gmra.mxu1 %v1327_v50  ;;  %994 = vmatmul.bf16.gmra.mxu3 %v1455_v51  ;;  %v1370_v49 = vld [vmem:[%s2052_s25 + $0x80] sm:$0xf]  ;;  %v1648_v50 = vld [vmem:[%s2052_s25 + $0x84] sm:$0xf0] }
  0x71   : > { %v1498_v51 = vld [vmem:[%s2052_s25 + $0x180] sm:$0xf]  ;;  %v1371_v57 = vor.u32 %v1648_v50, %v1370_v49  ;;  %v1388_v49 = vld [vmem:[%s2052_s25 + $0xa8] sm:$0xf0] }
  0x72   : > { %v1499_v58 = vor.u32 %v1680_v52, %v1498_v51  ;;  %v1683_v51 = vld [vmem:[%s2052_s25 + $0x1a4] sm:$0xf]  ;;  %v1516_v52 = vld [vmem:[%s2052_s25 + $0x1a8] sm:$0xf0] }
  0x7f   : > { %750 = vmatmul.bf16.gmra.mxu0 %v1331_v60  ;;  %830 = vmatmul.bf16.gmra.mxu2 %v1459_v61  ;;  %v1375_v60 = vor.u32 %v1647_v53, %v1372_v54  ;;  %v1503_v61 = vor.u32 %v1679_v55, %v1500_v56 }
  0x80   : > { %919 = vmatmul.bf16.gmra.mxu1 %v1335_v62  ;;  %999 = vmatmul.bf16.gmra.mxu3 %v1463_v63 }
  0x8f   : > { %755 = vmatmul.bf16.gmra.mxu0 %v1339_v8  ;;  %835 = vmatmul.bf16.gmra.mxu2 %v1467_v9  ;;  %v1378_v9 = vld [vmem:[%s2052_s25 + $0x90] sm:$0xf] }
  0x90   : > { %924 = vmatmul.bf16.gmra.mxu1 %v1343_v10  ;;  %1004 = vmatmul.bf16.gmra.mxu3 %v1471_v11 }
  0x9f   : > { %760 = vmatmul.bf16.gmra.mxu0 %v1347_v20  ;;  %840 = vmatmul.bf16.gmra.mxu2 %v1475_v21 }
  0xa0   : > { %929 = vmatmul.bf16.gmra.mxu1 %v1351_v22  ;;  %1009 = vmatmul.bf16.gmra.mxu3 %v1479_v23  ;;  %v1379_v23 = vor.u32 %v1650_v12, %v1378_v9 }
  0xaf   : > { %765 = vmatmul.bf16.gmra.mxu0 %v1355_v32  ;;  %845 = vmatmul.bf16.gmra.mxu2 %v1483_v33 }
  0xb0   : > { %934 = vmatmul.bf16.gmra.mxu1 %v1359_v34  ;;  %1014 = vmatmul.bf16.gmra.mxu3 %v1487_v35 }
  0xbf   : > { %770 = vmatmul.bf16.gmra.mxu0 %v1363_v44  ;;  %850 = vmatmul.bf16.gmra.mxu2 %v1491_v45  ;;  %v1652_v44 = vld [vmem:[%s2052_s25 + $0xa4] sm:$0xf0]  ;;  %v1514_v45 = vld [vmem:[%s2052_s25 + $0x1a0] sm:$0xf] }
  0xc0   : > { %939 = vmatmul.bf16.gmra.mxu1 %v1367_v46  ;;  %1019 = vmatmul.bf16.gmra.mxu3 %v1495_v47  ;;  %v1684_v46 = vld [vmem:[%s2052_s25 + $0x1a4] sm:$0xf0]  ;;  %v1651_v47 = vld [vmem:[%s2052_s25 + $0xa4] sm:$0xf]  ;;  %v1387_v56 = vor.u32 %v1652_v44, %v1386_v41 }
  0xcc   : > { %v736_v59 = vpop.f32.mrf.mxu0 }
  0xcd   : > { %v737_v62 = vadd.f32 %v2129_v48, %v736_v59  ;;  %v905_v63 = vpop.f32.mrf.mxu1  ;;  %v1391_v59 = vor.u32 %v1651_v47, %v1388_v49  ;;  %v1688_v47 = vld [vmem:[%s2052_s25 + $0x1c4] sm:$0xf0]  ;;  %v1655_v49 = vld [vmem:[%s2052_s25 + $0xc4] sm:$0xf] }
  0xcf   : > { %v906_v0 = vadd.f32 %v905_v63, %v737_v62  ;;  %775 = vmatmul.bf16.gmra.mxu0 %v1371_v57  ;;  %855 = vmatmul.bf16.gmra.mxu2 %v1499_v58  ;;  %v1515_v57 = vor.u32 %v1684_v46, %v1514_v45  ;;  %v1656_v45 = vld [vmem:[%s2052_s25 + $0xc4] sm:$0xf0]  ;;  %v1530_v46 = vld [vmem:[%s2052_s25 + $0x1c0] sm:$0xf] }
  0xd0   : > { %944 = vmatmul.bf16.gmra.mxu1 %v1375_v60  ;;  %1024 = vmatmul.bf16.gmra.mxu3 %v1503_v61  ;;  %v1519_v60 = vor.u32 %v1683_v51, %v1516_v52  ;;  %v1687_v52 = vld [vmem:[%s2052_s25 + $0x1c4] sm:$0xf] }
  0xd1   : > { %v1065_v1 = vmax.f32 %v906_v0, 0.0 }
  0xd2   : > { %v816_v2 = vpop.f32.mrf.mxu2 }
  0xd3   : > { %1129 = vst [vmem:[%s2142_s17] sm:$0xff] %v1065_v1  ;;  %v817_v3 = vadd.f32 %v2129_v48, %v816_v2  ;;  %v985_v4 = vpop.f32.mrf.mxu3 }
  0xd4   : > { %v738_v5 = vpop.f32.mrf.mxu0 }
  0xd5   : > { %v986_v6 = vadd.f32 %v985_v4, %v817_v3  ;;  %v739_v7 = vadd.f32 %v2129_v48, %v738_v5  ;;  %v907_v8 = vpop.f32.mrf.mxu1 }
  0xd7   : > { %v1097_v10 = vmax.f32 %v986_v6, 0.0  ;;  %v908_v11 = vadd.f32 %v907_v8, %v739_v7 }
  0xd9   : > { %1161 = vst [vmem:[%s2142_s17 + $0x100] sm:$0xff] %v1097_v10  ;;  %v1066_v17 = vmax.f32 %v908_v11, 0.0  ;;  %v1394_v10 = vld [vmem:[%s2052_s25 + $0xb0] sm:$0xf] }
  0xda   : > { %v818_v20 = vpop.f32.mrf.mxu2 }
  0xdb   : > { %1130 = vst [vmem:[%s2142_s17 + $0x8] sm:$0xff] %v1066_v17  ;;  %v819_v21 = vadd.f32 %v2129_v48, %v818_v20  ;;  %v987_v22 = vpop.f32.mrf.mxu3  ;;  %v1396_v17 = vld [vmem:[%s2052_s25 + $0xb8] sm:$0xf0] }
  0xdc   : > { %v741_v25 = vpop.f32.mrf.mxu0  ;;  %v1524_v20 = vld [vmem:[%s2052_s25 + $0x1b8] sm:$0xf0] }
  0xdd   : > { %v988_v28 = vadd.f32 %v987_v22, %v819_v21  ;;  %v742_v29 = vadd.f32 %v2129_v48, %v741_v25  ;;  %v910_v30 = vpop.f32.mrf.mxu1  ;;  %v1523_v25 = vor.u32 %v1686_v15, %v1522_v14  ;;  %v1658_v14 = vld [vmem:[%s2052_s25 + $0xd4] sm:$0xf0]  ;;  %v1538_v15 = vld [vmem:[%s2052_s25 + $0x1d0] sm:$0xf] }
  0xdf   : > { %v1098_v31 = vmax.f32 %v988_v28, 0.0  ;;  %v911_v32 = vadd.f32 %v910_v30, %v742_v29  ;;  %780 = vmatmul.bf16.gmra.mxu0 %v1379_v23  ;;  %860 = vmatmul.bf16.gmra.mxu2 %v1507_v24  ;;  %v1395_v24 = vor.u32 %v1654_v13, %v1394_v10  ;;  %v1527_v28 = vor.u32 %v1685_v19, %v1524_v20  ;;  %v1689_v20 = vld [vmem:[%s2052_s25 + $0x1d4] sm:$0xf] }
  0xe0   : > { %949 = vmatmul.bf16.gmra.mxu1 %v1383_v26  ;;  %1029 = vmatmul.bf16.gmra.mxu3 %v1511_v27  ;;  %v1399_v27 = vor.u32 %v1653_v16, %v1396_v17  ;;  %v1690_v16 = vld [vmem:[%s2052_s25 + $0x1d4] sm:$0xf0]  ;;  %v1657_v17 = vld [vmem:[%s2052_s25 + $0xd4] sm:$0xf] }
  0xe1   : > { %1162 = vst [vmem:[%s2142_s17 + $0x108] sm:$0xff] %v1098_v31  ;;  %v1067_v33 = vmax.f32 %v911_v32, 0.0 }
  0xe2   : > { %v821_v34 = vpop.f32.mrf.mxu2 }
  0xe3   : > { %1131 = vst [vmem:[%s2142_s17 + $0x10] sm:$0xff] %v1067_v33  ;;  %v822_v35 = vadd.f32 %v2129_v48, %v821_v34  ;;  %v990_v36 = vpop.f32.mrf.mxu3 }
  0xe4   : > { %v743_v37 = vpop.f32.mrf.mxu0 }
  0xe5   : > { %v991_v38 = vadd.f32 %v990_v36, %v822_v35  ;;  %v744_v39 = vadd.f32 %v2129_v48, %v743_v37  ;;  %v912_v40 = vpop.f32.mrf.mxu1 }
  0xe7   : > { %v1099_v42 = vmax.f32 %v991_v38, 0.0  ;;  %v913_v43 = vadd.f32 %v912_v40, %v744_v39 }
  0xe9   : > { %1163 = vst [vmem:[%s2142_s17 + $0x110] sm:$0xff] %v1099_v42  ;;  %v1068_v50 = vmax.f32 %v913_v43, 0.0  ;;  %v1402_v42 = vld [vmem:[%s2052_s25 + $0xc0] sm:$0xf] }
  0xea   : > { %v823_v53 = vpop.f32.mrf.mxu2 }
  0xeb   : > { %1132 = vst [vmem:[%s2142_s17 + $0x18] sm:$0xff] %v1068_v50  ;;  %v824_v54 = vadd.f32 %v2129_v48, %v823_v53  ;;  %v992_v55 = vpop.f32.mrf.mxu3  ;;  %v1404_v50 = vld [vmem:[%s2052_s25 + $0xc8] sm:$0xf0] }
  0xec   : > { %v746_v58 = vpop.f32.mrf.mxu0  ;;  %v1532_v53 = vld [vmem:[%s2052_s25 + $0x1c8] sm:$0xf0] }
  0xed   : > { %v993_v61 = vadd.f32 %v992_v55, %v824_v54  ;;  %v747_v62 = vadd.f32 %v2129_v48, %v746_v58  ;;  %v915_v63 = vpop.f32.mrf.mxu1  ;;  %v1531_v58 = vor.u32 %v1688_v47, %v1530_v46  ;;  %v1660_v46 = vld [vmem:[%s2052_s25 + $0xe4] sm:$0xf0]  ;;  %v1546_v47 = vld [vmem:[%s2052_s25 + $0x1e0] sm:$0xf] }
  0xef   : > { %v1100_v0 = vmax.f32 %v993_v61, 0.0  ;;  %v916_v1 = vadd.f32 %v915_v63, %v747_v62  ;;  %785 = vmatmul.bf16.gmra.mxu0 %v1387_v56  ;;  %865 = vmatmul.bf16.gmra.mxu2 %v1515_v57  ;;  %v1403_v57 = vor.u32 %v1656_v45, %v1402_v42  ;;  %v1535_v61 = vor.u32 %v1687_v52, %v1532_v53  ;;  %v1691_v53 = vld [vmem:[%s2052_s25 + $0x1e4] sm:$0xf] }
  0xf0   : > { %954 = vmatmul.bf16.gmra.mxu1 %v1391_v59  ;;  %1034 = vmatmul.bf16.gmra.mxu3 %v1519_v60  ;;  %v1407_v60 = vor.u32 %v1655_v49, %v1404_v50  ;;  %v1692_v49 = vld [vmem:[%s2052_s25 + $0x1e4] sm:$0xf0]  ;;  %v1659_v50 = vld [vmem:[%s2052_s25 + $0xe4] sm:$0xf] }
  0xf1   : > { %1164 = vst [vmem:[%s2142_s17 + $0x118] sm:$0xff] %v1100_v0  ;;  %v1069_v2 = vmax.f32 %v916_v1, 0.0 }
  0xf2   : > { %v826_v3 = vpop.f32.mrf.mxu2 }
  0xf3   : > { %1133 = vst [vmem:[%s2142_s17 + $0x20] sm:$0xff] %v1069_v2  ;;  %v827_v4 = vadd.f32 %v2129_v48, %v826_v3  ;;  %v995_v5 = vpop.f32.mrf.mxu3 }
  0xf4   : > { %v748_v6 = vpop.f32.mrf.mxu0 }
  0xf5   : > { %v996_v7 = vadd.f32 %v995_v5, %v827_v4  ;;  %v749_v8 = vadd.f32 %v2129_v48, %v748_v6  ;;  %v917_v9 = vpop.f32.mrf.mxu1 }
  0xf7   : > { %v1101_v11 = vmax.f32 %v996_v7, 0.0  ;;  %v918_v12 = vadd.f32 %v917_v9, %v749_v8 }
  0xf9   : > { %1165 = vst [vmem:[%s2142_s17 + $0x120] sm:$0xff] %v1101_v11  ;;  %v1070_v18 = vmax.f32 %v918_v12, 0.0  ;;  %v1410_v11 = vld [vmem:[%s2052_s25 + $0xd0] sm:$0xf] }
  0xfa   : > { %v828_v21 = vpop.f32.mrf.mxu2 }
  0xfb   : > { %1134 = vst [vmem:[%s2142_s17 + $0x28] sm:$0xff] %v1070_v18  ;;  %v829_v22 = vadd.f32 %v2129_v48, %v828_v21  ;;  %v997_v23 = vpop.f32.mrf.mxu3  ;;  %v1412_v18 = vld [vmem:[%s2052_s25 + $0xd8] sm:$0xf0] }
  0xfc   : > { %v751_v26 = vpop.f32.mrf.mxu0  ;;  %v1540_v21 = vld [vmem:[%s2052_s25 + $0x1d8] sm:$0xf0] }
  0xfd   : > { %v998_v29 = vadd.f32 %v997_v23, %v829_v22  ;;  %v752_v30 = vadd.f32 %v2129_v48, %v751_v26  ;;  %v920_v31 = vpop.f32.mrf.mxu1  ;;  %v1539_v26 = vor.u32 %v1690_v16, %v1538_v15  ;;  %v1662_v15 = vld [vmem:[%s2052_s25 + $0xf4] sm:$0xf0]  ;;  %v1554_v16 = vld [vmem:[%s2052_s25 + $0x1f0] sm:$0xf] }
  0xff   : > { %v1102_v32 = vmax.f32 %v998_v29, 0.0  ;;  %v921_v33 = vadd.f32 %v920_v31, %v752_v30  ;;  %790 = vmatmul.bf16.gmra.mxu0 %v1395_v24  ;;  %870 = vmatmul.bf16.gmra.mxu2 %v1523_v25  ;;  %v1411_v25 = vor.u32 %v1658_v14, %v1410_v11  ;;  %v1543_v29 = vor.u32 %v1689_v20, %v1540_v21  ;;  %v1693_v21 = vld [vmem:[%s2052_s25 + $0x1f4] sm:$0xf] }
 0x100   : > { %959 = vmatmul.bf16.gmra.mxu1 %v1399_v27  ;;  %1039 = vmatmul.bf16.gmra.mxu3 %v1527_v28  ;;  %v1415_v28 = vor.u32 %v1657_v17, %v1412_v18  ;;  %v1694_v17 = vld [vmem:[%s2052_s25 + $0x1f4] sm:$0xf0]  ;;  %v1661_v18 = vld [vmem:[%s2052_s25 + $0xf4] sm:$0xf] }
 0x101   : > { %1166 = vst [vmem:[%s2142_s17 + $0x128] sm:$0xff] %v1102_v32  ;;  %v1071_v34 = vmax.f32 %v921_v33, 0.0 }
 0x102   : > { %v831_v35 = vpop.f32.mrf.mxu2 }
 0x103   : > { %1135 = vst [vmem:[%s2142_s17 + $0x30] sm:$0xff] %v1071_v34  ;;  %v832_v36 = vadd.f32 %v2129_v48, %v831_v35  ;;  %v1000_v37 = vpop.f32.mrf.mxu3 }
 0x104   : > { %v753_v38 = vpop.f32.mrf.mxu0 }
 0x105   : > { %v1001_v39 = vadd.f32 %v1000_v37, %v832_v36  ;;  %v754_v40 = vadd.f32 %v2129_v48, %v753_v38  ;;  %v922_v41 = vpop.f32.mrf.mxu1 }
 0x107   : > { %v1103_v43 = vmax.f32 %v1001_v39, 0.0  ;;  %v923_v44 = vadd.f32 %v922_v41, %v754_v40 }
 0x109   : > { %1167 = vst [vmem:[%s2142_s17 + $0x130] sm:$0xff] %v1103_v43  ;;  %v1072_v51 = vmax.f32 %v923_v44, 0.0  ;;  %v1418_v43 = vld [vmem:[%s2052_s25 + $0xe0] sm:$0xf] }
 0x10a   : > { %v833_v54 = vpop.f32.mrf.mxu2 }
 0x10b   : > { %1136 = vst [vmem:[%s2142_s17 + $0x38] sm:$0xff] %v1072_v51  ;;  %v834_v55 = vadd.f32 %v2129_v48, %v833_v54  ;;  %v1002_v56 = vpop.f32.mrf.mxu3  ;;  %v1420_v51 = vld [vmem:[%s2052_s25 + $0xe8] sm:$0xf0] }
 0x10c   : > { %v756_v59 = vpop.f32.mrf.mxu0  ;;  %v1548_v54 = vld [vmem:[%s2052_s25 + $0x1e8] sm:$0xf0] }
 0x10d   : > { %v1003_v62 = vadd.f32 %v1002_v56, %v834_v55  ;;  %v757_v63 = vadd.f32 %v2129_v48, %v756_v59  ;;  %v925_v0 = vpop.f32.mrf.mxu1  ;;  %v1547_v59 = vor.u32 %v1692_v49, %v1546_v47 }
 0x10f   : > { %v1104_v1 = vmax.f32 %v1003_v62, 0.0  ;;  %v926_v2 = vadd.f32 %v925_v0, %v757_v63  ;;  %795 = vmatmul.bf16.gmra.mxu0 %v1403_v57  ;;  %875 = vmatmul.bf16.gmra.mxu2 %v1531_v58  ;;  %v1419_v58 = vor.u32 %v1660_v46, %v1418_v43  ;;  %v1551_v62 = vor.u32 %v1691_v53, %v1548_v54 }
 0x110   : > { %964 = vmatmul.bf16.gmra.mxu1 %v1407_v60  ;;  %1044 = vmatmul.bf16.gmra.mxu3 %v1535_v61  ;;  %v1423_v61 = vor.u32 %v1659_v50, %v1420_v51 }
 0x111   : > { %1168 = vst [vmem:[%s2142_s17 + $0x138] sm:$0xff] %v1104_v1  ;;  %v1073_v3 = vmax.f32 %v926_v2, 0.0 }
 0x112   : > { %v836_v4 = vpop.f32.mrf.mxu2 }
 0x113   : > { %1137 = vst [vmem:[%s2142_s17 + $0x40] sm:$0xff] %v1073_v3  ;;  %v837_v5 = vadd.f32 %v2129_v48, %v836_v4  ;;  %v1005_v6 = vpop.f32.mrf.mxu3 }
 0x114   : > { %v758_v7 = vpop.f32.mrf.mxu0 }
 0x115   : > { %v1006_v8 = vadd.f32 %v1005_v6, %v837_v5  ;;  %v759_v9 = vadd.f32 %v2129_v48, %v758_v7  ;;  %v927_v10 = vpop.f32.mrf.mxu1 }
 0x117   : > { %v1105_v12 = vmax.f32 %v1006_v8, 0.0  ;;  %v928_v13 = vadd.f32 %v927_v10, %v759_v9 }
 0x119   : > { %1169 = vst [vmem:[%s2142_s17 + $0x140] sm:$0xff] %v1105_v12  ;;  %v1074_v19 = vmax.f32 %v928_v13, 0.0  ;;  %v1426_v12 = vld [vmem:[%s2052_s25 + $0xf0] sm:$0xf] }
 0x11a   : > { %v838_v22 = vpop.f32.mrf.mxu2 }
 0x11b   : > { %1138 = vst [vmem:[%s2142_s17 + $0x48] sm:$0xff] %v1074_v19  ;;  %v839_v23 = vadd.f32 %v2129_v48, %v838_v22  ;;  %v1007_v24 = vpop.f32.mrf.mxu3  ;;  %v1428_v19 = vld [vmem:[%s2052_s25 + $0xf8] sm:$0xf0] }
 0x11c   : > { %v761_v27 = vpop.f32.mrf.mxu0  ;;  %v1556_v22 = vld [vmem:[%s2052_s25 + $0x1f8] sm:$0xf0] }
 0x11d   : > { %v1008_v30 = vadd.f32 %v1007_v24, %v839_v23  ;;  %v762_v31 = vadd.f32 %v2129_v48, %v761_v27  ;;  %v930_v32 = vpop.f32.mrf.mxu1  ;;  %v1555_v27 = vor.u32 %v1694_v17, %v1554_v16 }
 0x11f   : > { %v1106_v33 = vmax.f32 %v1008_v30, 0.0  ;;  %v931_v34 = vadd.f32 %v930_v32, %v762_v31  ;;  %800 = vmatmul.bf16.gmra.mxu0 %v1411_v25  ;;  %880 = vmatmul.bf16.gmra.mxu2 %v1539_v26  ;;  %v1427_v26 = vor.u32 %v1662_v15, %v1426_v12  ;;  %v1559_v30 = vor.u32 %v1693_v21, %v1556_v22 }
 0x120   : > { %969 = vmatmul.bf16.gmra.mxu1 %v1415_v28  ;;  %1049 = vmatmul.bf16.gmra.mxu3 %v1543_v29  ;;  %v1431_v29 = vor.u32 %v1661_v18, %v1428_v19 }
 0x121   : > { %1170 = vst [vmem:[%s2142_s17 + $0x148] sm:$0xff] %v1106_v33  ;;  %v1075_v35 = vmax.f32 %v931_v34, 0.0 }
 0x122   : > { %v841_v36 = vpop.f32.mrf.mxu2 }
 0x123   : > { %1139 = vst [vmem:[%s2142_s17 + $0x50] sm:$0xff] %v1075_v35  ;;  %v842_v37 = vadd.f32 %v2129_v48, %v841_v36  ;;  %v1010_v38 = vpop.f32.mrf.mxu3 }
 0x124   : > { %v763_v39 = vpop.f32.mrf.mxu0 }
 0x125   : > { %v1011_v40 = vadd.f32 %v1010_v38, %v842_v37  ;;  %v764_v41 = vadd.f32 %v2129_v48, %v763_v39  ;;  %v932_v42 = vpop.f32.mrf.mxu1 }
 0x127   : > { %v1107_v44 = vmax.f32 %v1011_v40, 0.0  ;;  %v933_v45 = vadd.f32 %v932_v42, %v764_v41 }
 0x129   : > { %1171 = vst [vmem:[%s2142_s17 + $0x150] sm:$0xff] %v1107_v44  ;;  %v1076_v52 = vmax.f32 %v933_v45, 0.0 }
 0x12a   : > { %v843_v55 = vpop.f32.mrf.mxu2 }
 0x12b   : > { %1140 = vst [vmem:[%s2142_s17 + $0x58] sm:$0xff] %v1076_v52  ;;  %v844_v56 = vadd.f32 %v2129_v48, %v843_v55  ;;  %v1012_v57 = vpop.f32.mrf.mxu3 }
 0x12c   : > { %v766_v60 = vpop.f32.mrf.mxu0 }
 0x12d   : > { %v1013_v63 = vadd.f32 %v1012_v57, %v844_v56  ;;  %v767_v0 = vadd.f32 %v2129_v48, %v766_v60  ;;  %v935_v1 = vpop.f32.mrf.mxu1 }
 0x12f   : > { %v1108_v2 = vmax.f32 %v1013_v63, 0.0  ;;  %v936_v3 = vadd.f32 %v935_v1, %v767_v0  ;;  %805 = vmatmul.bf16.gmra.mxu0 %v1419_v58  ;;  %885 = vmatmul.bf16.gmra.mxu2 %v1547_v59 }
 0x130   : > { %974 = vmatmul.bf16.gmra.mxu1 %v1423_v61  ;;  %1054 = vmatmul.bf16.gmra.mxu3 %v1551_v62 }
 0x131   : > { %1172 = vst [vmem:[%s2142_s17 + $0x158] sm:$0xff] %v1108_v2  ;;  %v1077_v4 = vmax.f32 %v936_v3, 0.0 }
 0x132   : > { %v846_v5 = vpop.f32.mrf.mxu2 }
 0x133   : > { %1141 = vst [vmem:[%s2142_s17 + $0x60] sm:$0xff] %v1077_v4  ;;  %v847_v6 = vadd.f32 %v2129_v48, %v846_v5  ;;  %v1015_v7 = vpop.f32.mrf.mxu3 }
 0x134   : > { %v768_v8 = vpop.f32.mrf.mxu0 }
 0x135   : > { %v1016_v9 = vadd.f32 %v1015_v7, %v847_v6  ;;  %v769_v10 = vadd.f32 %v2129_v48, %v768_v8  ;;  %v937_v11 = vpop.f32.mrf.mxu1 }
 0x137   : > { %v1109_v13 = vmax.f32 %v1016_v9, 0.0  ;;  %v938_v14 = vadd.f32 %v937_v11, %v769_v10 }
 0x139   : > { %1173 = vst [vmem:[%s2142_s17 + $0x160] sm:$0xff] %v1109_v13  ;;  %v1078_v20 = vmax.f32 %v938_v14, 0.0 }
 0x13a   : > { %v848_v23 = vpop.f32.mrf.mxu2 }
 0x13b   : > { %1142 = vst [vmem:[%s2142_s17 + $0x68] sm:$0xff] %v1078_v20  ;;  %v849_v24 = vadd.f32 %v2129_v48, %v848_v23  ;;  %v1017_v25 = vpop.f32.mrf.mxu3 }
 0x13c   : > { %v771_v28 = vpop.f32.mrf.mxu0 }
 0x13d   : > { %v1018_v31 = vadd.f32 %v1017_v25, %v849_v24  ;;  %v772_v32 = vadd.f32 %v2129_v48, %v771_v28  ;;  %v940_v33 = vpop.f32.mrf.mxu1 }
 0x13f   : > { %v1110_v34 = vmax.f32 %v1018_v31, 0.0  ;;  %v941_v35 = vadd.f32 %v940_v33, %v772_v32  ;;  %810 = vmatmul.bf16.gmra.mxu0 %v1427_v26  ;;  %890 = vmatmul.bf16.gmra.mxu2 %v1555_v27 }
 0x140   : > { %979 = vmatmul.bf16.gmra.mxu1 %v1431_v29  ;;  %1059 = vmatmul.bf16.gmra.mxu3 %v1559_v30 }
 0x141   : > { %1174 = vst [vmem:[%s2142_s17 + $0x168] sm:$0xff] %v1110_v34  ;;  %v1079_v36 = vmax.f32 %v941_v35, 0.0 }
 0x142   : > { %v851_v37 = vpop.f32.mrf.mxu2 }
 0x143   : > { %1143 = vst [vmem:[%s2142_s17 + $0x70] sm:$0xff] %v1079_v36  ;;  %v852_v38 = vadd.f32 %v2129_v48, %v851_v37  ;;  %v1020_v39 = vpop.f32.mrf.mxu3 }
 0x144   : > { %v773_v40 = vpop.f32.mrf.mxu0 }
 0x145   : > { %v1021_v41 = vadd.f32 %v1020_v39, %v852_v38  ;;  %v774_v42 = vadd.f32 %v2129_v48, %v773_v40  ;;  %v942_v43 = vpop.f32.mrf.mxu1 }
 0x147   : > { %v1111_v44 = vmax.f32 %v1021_v41, 0.0  ;;  %v943_v45 = vadd.f32 %v942_v43, %v774_v42 }
 0x149   : > { %1175 = vst [vmem:[%s2142_s17 + $0x170] sm:$0xff] %v1111_v44  ;;  %v1080_v46 = vmax.f32 %v943_v45, 0.0 }
 0x14a   : > { %v853_v47 = vpop.f32.mrf.mxu2 }
 0x14b   : > { %1144 = vst [vmem:[%s2142_s17 + $0x78] sm:$0xff] %v1080_v46  ;;  %v854_v49 = vadd.f32 %v2129_v48, %v853_v47  ;;  %v1022_v50 = vpop.f32.mrf.mxu3 }
 0x14c   : > { %v776_v51 = vpop.f32.mrf.mxu0 }
 0x14d   : > { %v1023_v52 = vadd.f32 %v1022_v50, %v854_v49  ;;  %v777_v53 = vadd.f32 %v2129_v48, %v776_v51  ;;  %v945_v54 = vpop.f32.mrf.mxu1 }
 0x14f   : > { %v1112_v55 = vmax.f32 %v1023_v52, 0.0  ;;  %v946_v56 = vadd.f32 %v945_v54, %v777_v53 }
 0x151   : > { %1176 = vst [vmem:[%s2142_s17 + $0x178] sm:$0xff] %v1112_v55  ;;  %v1081_v57 = vmax.f32 %v946_v56, 0.0 }
 0x152   : > { %v856_v58 = vpop.f32.mrf.mxu2 }
 0x153   : > { %1145 = vst [vmem:[%s2142_s17 + $0x80] sm:$0xff] %v1081_v57  ;;  %v857_v59 = vadd.f32 %v2129_v48, %v856_v58  ;;  %v1025_v60 = vpop.f32.mrf.mxu3 }
 0x154   : > { %v778_v61 = vpop.f32.mrf.mxu0 }
 0x155   : > { %v1026_v62 = vadd.f32 %v1025_v60, %v857_v59  ;;  %v779_v63 = vadd.f32 %v2129_v48, %v778_v61  ;;  %v947_v0 = vpop.f32.mrf.mxu1 }
 0x157   : > { %v1113_v1 = vmax.f32 %v1026_v62, 0.0  ;;  %v948_v2 = vadd.f32 %v947_v0, %v779_v63 }
 0x159   : > { %1177 = vst [vmem:[%s2142_s17 + $0x180] sm:$0xff] %v1113_v1  ;;  %v1082_v3 = vmax.f32 %v948_v2, 0.0 }
 0x15a   : > { %v858_v4 = vpop.f32.mrf.mxu2 }
 0x15b   : > { %1146 = vst [vmem:[%s2142_s17 + $0x88] sm:$0xff] %v1082_v3  ;;  %v859_v5 = vadd.f32 %v2129_v48, %v858_v4  ;;  %v1027_v6 = vpop.f32.mrf.mxu3 }
 0x15c   : > { %v781_v7 = vpop.f32.mrf.mxu0 }
 0x15d   : > { %v1028_v8 = vadd.f32 %v1027_v6, %v859_v5  ;;  %v782_v9 = vadd.f32 %v2129_v48, %v781_v7  ;;  %v950_v10 = vpop.f32.mrf.mxu1 }
 0x15f   : > { %v1114_v11 = vmax.f32 %v1028_v8, 0.0  ;;  %v951_v12 = vadd.f32 %v950_v10, %v782_v9 }
 0x161   : > { %1178 = vst [vmem:[%s2142_s17 + $0x188] sm:$0xff] %v1114_v11  ;;  %v1083_v13 = vmax.f32 %v951_v12, 0.0 }
 0x162   : > { %v861_v14 = vpop.f32.mrf.mxu2 }
 0x163   : > { %1147 = vst [vmem:[%s2142_s17 + $0x90] sm:$0xff] %v1083_v13  ;;  %v862_v15 = vadd.f32 %v2129_v48, %v861_v14  ;;  %v1030_v16 = vpop.f32.mrf.mxu3 }
 0x164   : > { %v783_v17 = vpop.f32.mrf.mxu0 }
 0x165   : > { %v1031_v18 = vadd.f32 %v1030_v16, %v862_v15  ;;  %v784_v19 = vadd.f32 %v2129_v48, %v783_v17  ;;  %v952_v20 = vpop.f32.mrf.mxu1 }
 0x167   : > { %v1115_v21 = vmax.f32 %v1031_v18, 0.0  ;;  %v953_v22 = vadd.f32 %v952_v20, %v784_v19 }
 0x169   : > { %1179 = vst [vmem:[%s2142_s17 + $0x190] sm:$0xff] %v1115_v21  ;;  %v1084_v23 = vmax.f32 %v953_v22, 0.0 }
 0x16a   : > { %v863_v24 = vpop.f32.mrf.mxu2 }
 0x16b   : > { %1148 = vst [vmem:[%s2142_s17 + $0x98] sm:$0xff] %v1084_v23  ;;  %v864_v25 = vadd.f32 %v2129_v48, %v863_v24  ;;  %v1032_v26 = vpop.f32.mrf.mxu3 }
 0x16c   : > { %v786_v27 = vpop.f32.mrf.mxu0 }
 0x16d   : > { %v1033_v28 = vadd.f32 %v1032_v26, %v864_v25  ;;  %v787_v29 = vadd.f32 %v2129_v48, %v786_v27  ;;  %v955_v30 = vpop.f32.mrf.mxu1 }
 0x16f   : > { %v1116_v31 = vmax.f32 %v1033_v28, 0.0  ;;  %v956_v32 = vadd.f32 %v955_v30, %v787_v29 }
 0x171   : > { %1180 = vst [vmem:[%s2142_s17 + $0x198] sm:$0xff] %v1116_v31  ;;  %v1085_v33 = vmax.f32 %v956_v32, 0.0 }
 0x172   : > { %v866_v34 = vpop.f32.mrf.mxu2 }
 0x173   : > { %1149 = vst [vmem:[%s2142_s17 + $0xa0] sm:$0xff] %v1085_v33  ;;  %v867_v35 = vadd.f32 %v2129_v48, %v866_v34  ;;  %v1035_v36 = vpop.f32.mrf.mxu3 }
 0x174   : > { %v788_v37 = vpop.f32.mrf.mxu0 }
 0x175   : > { %v1036_v38 = vadd.f32 %v1035_v36, %v867_v35  ;;  %v789_v39 = vadd.f32 %v2129_v48, %v788_v37  ;;  %v957_v40 = vpop.f32.mrf.mxu1 }
 0x177   : > { %v1117_v41 = vmax.f32 %v1036_v38, 0.0  ;;  %v958_v42 = vadd.f32 %v957_v40, %v789_v39 }
 0x179   : > { %1181 = vst [vmem:[%s2142_s17 + $0x1a0] sm:$0xff] %v1117_v41  ;;  %v1086_v43 = vmax.f32 %v958_v42, 0.0 }
 0x17a   : > { %v868_v44 = vpop.f32.mrf.mxu2 }
 0x17b   : > { %1150 = vst [vmem:[%s2142_s17 + $0xa8] sm:$0xff] %v1086_v43  ;;  %v869_v45 = vadd.f32 %v2129_v48, %v868_v44  ;;  %v1037_v46 = vpop.f32.mrf.mxu3 }
 0x17c   : > { %v791_v47 = vpop.f32.mrf.mxu0 }
 0x17d   : > { %v1038_v49 = vadd.f32 %v1037_v46, %v869_v45  ;;  %v792_v50 = vadd.f32 %v2129_v48, %v791_v47  ;;  %v960_v51 = vpop.f32.mrf.mxu1 }
 0x17f   : > { %v1118_v52 = vmax.f32 %v1038_v49, 0.0  ;;  %v961_v53 = vadd.f32 %v960_v51, %v792_v50 }
 0x181   : > { %1182 = vst [vmem:[%s2142_s17 + $0x1a8] sm:$0xff] %v1118_v52  ;;  %v1087_v54 = vmax.f32 %v961_v53, 0.0 }
 0x182   : > { %v871_v55 = vpop.f32.mrf.mxu2 }
 0x183   : > { %1151 = vst [vmem:[%s2142_s17 + $0xb0] sm:$0xff] %v1087_v54  ;;  %v872_v56 = vadd.f32 %v2129_v48, %v871_v55  ;;  %v1040_v57 = vpop.f32.mrf.mxu3 }
 0x184   : > { %v793_v58 = vpop.f32.mrf.mxu0 }
 0x185   : > { %v1041_v59 = vadd.f32 %v1040_v57, %v872_v56  ;;  %v794_v60 = vadd.f32 %v2129_v48, %v793_v58  ;;  %v962_v61 = vpop.f32.mrf.mxu1 }
 0x187   : > { %v1119_v62 = vmax.f32 %v1041_v59, 0.0  ;;  %v963_v63 = vadd.f32 %v962_v61, %v794_v60 }
 0x189   : > { %1183 = vst [vmem:[%s2142_s17 + $0x1b0] sm:$0xff] %v1119_v62  ;;  %v1088_v0 = vmax.f32 %v963_v63, 0.0 }
 0x18a   : > { %v873_v1 = vpop.f32.mrf.mxu2 }
 0x18b   : > { %1152 = vst [vmem:[%s2142_s17 + $0xb8] sm:$0xff] %v1088_v0  ;;  %v874_v2 = vadd.f32 %v2129_v48, %v873_v1  ;;  %v1042_v3 = vpop.f32.mrf.mxu3 }
 0x18c   : > { %v796_v4 = vpop.f32.mrf.mxu0 }
 0x18d   : > { %v1043_v5 = vadd.f32 %v1042_v3, %v874_v2  ;;  %v797_v6 = vadd.f32 %v2129_v48, %v796_v4  ;;  %v965_v7 = vpop.f32.mrf.mxu1 }
 0x18f   : > { %v1120_v8 = vmax.f32 %v1043_v5, 0.0  ;;  %v966_v9 = vadd.f32 %v965_v7, %v797_v6 }
 0x191   : > { %1184 = vst [vmem:[%s2142_s17 + $0x1b8] sm:$0xff] %v1120_v8  ;;  %v1089_v10 = vmax.f32 %v966_v9, 0.0 }
 0x192   : > { %v876_v11 = vpop.f32.mrf.mxu2 }
 0x193   : > { %1153 = vst [vmem:[%s2142_s17 + $0xc0] sm:$0xff] %v1089_v10  ;;  %v877_v12 = vadd.f32 %v2129_v48, %v876_v11  ;;  %v1045_v13 = vpop.f32.mrf.mxu3 }
 0x194   : > { %v798_v14 = vpop.f32.mrf.mxu0 }
 0x195   : > { %v1046_v15 = vadd.f32 %v1045_v13, %v877_v12  ;;  %v799_v16 = vadd.f32 %v2129_v48, %v798_v14  ;;  %v967_v17 = vpop.f32.mrf.mxu1 }
 0x197   : > { %v1121_v18 = vmax.f32 %v1046_v15, 0.0  ;;  %v968_v19 = vadd.f32 %v967_v17, %v799_v16 }
 0x199   : > { %1185 = vst [vmem:[%s2142_s17 + $0x1c0] sm:$0xff] %v1121_v18  ;;  %v1090_v20 = vmax.f32 %v968_v19, 0.0 }
 0x19a   : > { %v878_v21 = vpop.f32.mrf.mxu2 }
 0x19b   : > { %1154 = vst [vmem:[%s2142_s17 + $0xc8] sm:$0xff] %v1090_v20  ;;  %v879_v22 = vadd.f32 %v2129_v48, %v878_v21  ;;  %v1047_v23 = vpop.f32.mrf.mxu3 }
 0x19c   : > { %v801_v24 = vpop.f32.mrf.mxu0 }
 0x19d   : > { %v1048_v25 = vadd.f32 %v1047_v23, %v879_v22  ;;  %v802_v26 = vadd.f32 %v2129_v48, %v801_v24  ;;  %v970_v27 = vpop.f32.mrf.mxu1 }
 0x19f   : > { %v1122_v28 = vmax.f32 %v1048_v25, 0.0  ;;  %v971_v29 = vadd.f32 %v970_v27, %v802_v26 }
 0x1a1   : > { %1186 = vst [vmem:[%s2142_s17 + $0x1c8] sm:$0xff] %v1122_v28  ;;  %v1091_v30 = vmax.f32 %v971_v29, 0.0 }
 0x1a2   : > { %v881_v31 = vpop.f32.mrf.mxu2 }
 0x1a3   : > { %1155 = vst [vmem:[%s2142_s17 + $0xd0] sm:$0xff] %v1091_v30  ;;  %v882_v32 = vadd.f32 %v2129_v48, %v881_v31  ;;  %v1050_v33 = vpop.f32.mrf.mxu3 }
 0x1a4   : > { %v803_v34 = vpop.f32.mrf.mxu0 }
 0x1a5   : > { %v1051_v35 = vadd.f32 %v1050_v33, %v882_v32  ;;  %v804_v36 = vadd.f32 %v2129_v48, %v803_v34  ;;  %v972_v37 = vpop.f32.mrf.mxu1 }
 0x1a7   : > { %v1123_v38 = vmax.f32 %v1051_v35, 0.0  ;;  %v973_v39 = vadd.f32 %v972_v37, %v804_v36 }
 0x1a9   : > { %1187 = vst [vmem:[%s2142_s17 + $0x1d0] sm:$0xff] %v1123_v38  ;;  %v1092_v40 = vmax.f32 %v973_v39, 0.0 }
 0x1aa   : > { %v883_v41 = vpop.f32.mrf.mxu2 }
 0x1ab   : > { %1156 = vst [vmem:[%s2142_s17 + $0xd8] sm:$0xff] %v1092_v40  ;;  %v884_v42 = vadd.f32 %v2129_v48, %v883_v41  ;;  %v1052_v43 = vpop.f32.mrf.mxu3 }
 0x1ac   : > { %v806_v44 = vpop.f32.mrf.mxu0 }
 0x1ad   : > { %v1053_v45 = vadd.f32 %v1052_v43, %v884_v42  ;;  %v807_v46 = vadd.f32 %v2129_v48, %v806_v44  ;;  %v975_v47 = vpop.f32.mrf.mxu1 }
 0x1af   : > { %v1124_v49 = vmax.f32 %v1053_v45, 0.0  ;;  %v976_v50 = vadd.f32 %v975_v47, %v807_v46 }
 0x1b1   : > { %1188 = vst [vmem:[%s2142_s17 + $0x1d8] sm:$0xff] %v1124_v49  ;;  %v1093_v51 = vmax.f32 %v976_v50, 0.0 }
 0x1b2   : > { %v886_v52 = vpop.f32.mrf.mxu2 }
 0x1b3   : > { %1157 = vst [vmem:[%s2142_s17 + $0xe0] sm:$0xff] %v1093_v51  ;;  %v887_v53 = vadd.f32 %v2129_v48, %v886_v52  ;;  %v1055_v54 = vpop.f32.mrf.mxu3 }
 0x1b4   : > { %v808_v55 = vpop.f32.mrf.mxu0 }
 0x1b5   : > { %v1056_v56 = vadd.f32 %v1055_v54, %v887_v53  ;;  %v809_v57 = vadd.f32 %v2129_v48, %v808_v55  ;;  %v977_v58 = vpop.f32.mrf.mxu1 }
 0x1b7   : > { %v1125_v59 = vmax.f32 %v1056_v56, 0.0  ;;  %v978_v60 = vadd.f32 %v977_v58, %v809_v57 }
 0x1b9   : > { %1189 = vst [vmem:[%s2142_s17 + $0x1e0] sm:$0xff] %v1125_v59  ;;  %v1094_v61 = vmax.f32 %v978_v60, 0.0 }
 0x1ba   : > { %v888_v62 = vpop.f32.mrf.mxu2 }
 0x1bb   : > { %1158 = vst [vmem:[%s2142_s17 + $0xe8] sm:$0xff] %v1094_v61  ;;  %v889_v63 = vadd.f32 %v2129_v48, %v888_v62  ;;  %v1057_v0 = vpop.f32.mrf.mxu3 }
 0x1bc   : > { %v811_v1 = vpop.f32.mrf.mxu0 }
 0x1bd   : > { %v1058_v2 = vadd.f32 %v1057_v0, %v889_v63  ;;  %v812_v3 = vadd.f32 %v2129_v48, %v811_v1  ;;  %v980_v4 = vpop.f32.mrf.mxu1 }
 0x1bf   : > { %v1126_v5 = vmax.f32 %v1058_v2, 0.0  ;;  %v981_v6 = vadd.f32 %v980_v4, %v812_v3 }
 0x1c1   : > { %1190 = vst [vmem:[%s2142_s17 + $0x1e8] sm:$0xff] %v1126_v5  ;;  %v1095_v7 = vmax.f32 %v981_v6, 0.0 }
 0x1c2   : > { %v891_v8 = vpop.f32.mrf.mxu2 }
 0x1c3   : > { %1159 = vst [vmem:[%s2142_s17 + $0xf0] sm:$0xff] %v1095_v7  ;;  %v892_v9 = vadd.f32 %v2129_v48, %v891_v8  ;;  %v1060_v10 = vpop.f32.mrf.mxu3 }
 0x1c4   : > { %v813_v11 = vpop.f32.mrf.mxu0 }
 0x1c5   : > { %v1061_v12 = vadd.f32 %v1060_v10, %v892_v9  ;;  %v814_v13 = vadd.f32 %v2129_v48, %v813_v11  ;;  %v982_v14 = vpop.f32.mrf.mxu1 }
 0x1c7   : > { %v1127_v15 = vmax.f32 %v1061_v12, 0.0  ;;  %v983_v16 = vadd.f32 %v982_v14, %v814_v13 }
 0x1c9   : > { %1191 = vst [vmem:[%s2142_s17 + $0x1f0] sm:$0xff] %v1127_v15  ;;  %v1096_v17 = vmax.f32 %v983_v16, 0.0 }
 0x1ca   : > { %v893_v18 = vpop.f32.mrf.mxu2 }
 0x1cb   : > { %1160 = vst [vmem:[%s2142_s17 + $0xf8] sm:$0xff] %v1096_v17  ;;  %v894_v19 = vadd.f32 %v2129_v48, %v893_v18  ;;  %v1062_v20 = vpop.f32.mrf.mxu3 }
 0x1cd   : > { %v1063_v21 = vadd.f32 %v1062_v20, %v894_v19 }
 0x1cf   : > { %v1128_v22 = vmax.f32 %v1063_v21, 0.0 }
 0x1d1   : > { %1192 = vst [vmem:[%s2142_s17 + $0x1f8] sm:$0xff] %v1128_v22 }
 0x1d2   : > { %1879 = shalt.err (!%p1876_p10)
}
 0x1d3   : > { %s1929_s10 = smov 128   ;;  %s1930_s25 = smov 8  }
 0x1d4   : > { %1734 = dma.vmem_to_hbm [thread:$0]  (%p2018_p7), %s1207_s28, 8192, %s1209_s29, %s1194_s16, %s1929_s10, %s1929_s10, %s1930_s25  }
 0x1d5 PF: > { %s1223_s18 = sand.u32 1, %s1910_s12   ;;  %p2370_p12 = scmp.ge.s32.totalorder %s1922_s15, 2 }
 0x1d6   : > { %s1224_s23 = scalar_lea.sflag [#allocation4], %s1223_s18 }
 0x1d7   : > { %p1745_p13 = pnand %p2370_p12, %p1986_p6 }
 0x1d9   : > { %p1746_p0 = pneg %p1745_p13 }
 0x1db   : > { %1905 = dma.done.wait (%p1746_p0), %s1224_s23, 8192  }
 0x1dc   : > { %1907 = vsyncadd (%p1746_p0), %s1224_s23, 4294959104  ;;  %p17_p3 = scmp.ge.s32.totalorder %s2004_s26, 4   ;;  %s2371_s12 = smov %s1914_s13 }
 0x1dd   : > { %s2372_s13 = smov %s1918_s14  ;;  %s2373_s14 = smov %s2014_s4 }
 0x1de   : > { %s2374_s15 = smov %s2004_s26  ;;  %19 = sbr.rel (!%p17_p3) target bundleno = 6 (0x6), region = 81 }
 0x1e3   :  { %1230 = vsyncpa [#allocation3], 1 }
 0x1e4   :  { %1232 = vsyncpa [#allocation3 + $0x1], 1 }
 0x1e5   :  { %1233 = vsyncpa [#allocation6], 1 }
 0x1e6   :  { %1234 = vsyncpa [#allocation4], 1 }
 0x1e7   :  { %1236 = vsyncpa [#allocation4 + $0x1], 1 }

</bundles_post_ra>
